<compile_context>
chip_gen: v7x
topology: tpu7x:2x2x1
jax: 0.10.0
libtpu: 0.0.40
codegen_flags: <defaults>
</compile_context>

<pallas_src>
import functools

import jax
import jax.numpy as jnp
import numpy as np
from jax import lax
from jax.experimental import pallas as pl
from jax.experimental.pallas import tpu as pltpu


_LANE_ALIGN = 256  # MXU width on v6e/v7x (also a multiple of the 128-lane vreg)


# ---------------------------------------------------------------------------
# Pallas kernel: one grid step = Bt batch elements folded into the lane axis.
# ---------------------------------------------------------------------------
def _temporal_block_kernel(x_ref, w1_ref, w2_ref, *rest, K, dilation, L,
                           fuse1, fuse2, has_downsample):
    """Refs (per grid step):
      x_ref  : (C_in,  Bt*L)  activations, channel-major, batch folded in lanes
      w1_ref : (C_out, K*C_in)  [fused]  or (K, C_out, C_in)  [per-tap]
      w2_ref : (C_out, K*C_out) [fused]  or (K, C_out, C_out) [per-tap]
      wd_ref : (C_out, C_in)   1x1 downsample (only when has_downsample)
      b_ref  : (C_out, 3)      [b1 | b2 | bd] columns, f32
      out_ref: (C_out, Bt*L)
    K here is the number of LIVE taps (dead taps pruned in the wrapper).
    """
    if has_downsample:
        wd_ref, b_ref, out_ref = rest
    else:
        b_ref, out_ref = rest

    mm_dt = w1_ref.dtype                       # MXU operand dtype (bf16 / f32)
    x = x_ref[...]                             # already compute_dtype
    btl = x.shape[-1]

    # time index inside each folded batch element: lane = b_local * L + t
    t_idx = lax.broadcasted_iota(jnp.int32, (1, btl), 1) % L
    shifts = [(K - 1 - k) * dilation for k in range(K)]
    masks = {s: t_idx >= s for s in shifts if s > 0}   # hoisted, reused by both convs

    def shifted(src, s):
        """Causally right-shift `src` by s lanes.  Batch folding is safe: lanes
        with t >= s pull from the same folded segment; lanes with t < s are the
        causal-pad zeros (mask covers the roll wrap as well)."""
        if s == 0:
            return src
        rolled = pltpu.roll(src, shift=s, axis=1)
        return jnp.where(masks[s], rolled, jnp.zeros_like(rolled))

    def causal_conv(src, w_ref, fuse):
        """src: (C, btl) in mm_dt.  Returns f32 (C_out, btl)."""
        if fuse:
            # shallow contraction: stack taps k-major -> one deep MXU contraction
            slab = (jnp.concatenate([shifted(src, s) for s in shifts], axis=0)
                    if K > 1 else shifted(src, shifts[0]))
            return jnp.dot(w_ref[...], slab, preferred_element_type=jnp.float32)
        # deep contraction: per-tap matmuls accumulated in f32 (no im2col slab)
        acc = None
        for k, s in enumerate(shifts):
            part = jnp.dot(w_ref[k], shifted(src, s),
                           preferred_element_type=jnp.float32)
            acc = part if acc is None else acc + part
        return acc

    b = b_ref[...]                             # (C_out, 3) f32
    b1, b2, bd = b[:, 0:1], b[:, 1:2], b[:, 2:3]

    # ---- conv1 -> bias -> ReLU (f32 elementwise) ----
    h = jnp.maximum(causal_conv(x, w1_ref, fuse1) + b1, 0.0)
    # TODO(synk): dropout1/dropout2 omitted (eval-mode semantics -> identity).

    # ---- conv2 on the intermediate (cast to MXU dtype once) ----
    o = jnp.maximum(causal_conv(h.astype(mm_dt), w2_ref, fuse2) + b2, 0.0)

    # ---- residual branch + final ReLU ----
    if has_downsample:
        res = jnp.dot(wd_ref[...], x, preferred_element_type=jnp.float32) + bd
    else:
        # identity residual (reference has no bias on this path)
        res = x.astype(jnp.float32)
    out_ref[...] = jnp.maximum(o + res, 0.0).astype(out_ref.dtype)


# ---------------------------------------------------------------------------
# Wrapper helpers: VMEM accounting, tiling, weight massaging.
# ---------------------------------------------------------------------------
def _vmem_limit_bytes():
    """Generation-aware scoped-VMEM limit (v5e/v6e: 128 MiB phys, v7x: 64 MiB)."""
    cap = None
    try:
        cap = getattr(pltpu.get_tpu_info(), "vmem_capacity_bytes", None)
    except Exception:
        cap = None
    if not cap:
        cap = 64 << 20                      # conservative: v7x per-TensorCore VMEM
    return max(32 << 20, min(cap - (8 << 20), 112 << 20))


def _pick_batch_tile(B, L, C_in, C_out, K_live, bytes_mm, budget_bytes):
    """Pick how many batch elements to fold into one grid step.

    Counts the real live set per folded lane (x tile + tap slab / per-tap
    working set + f32 intermediates + out tile, incl. double buffering),
    keeps lane tiles 256-aligned, and prefers >= 2 grid steps so both v7x
    TensorCores get work (harmless ~0.35 us extra on 1-TC chips)."""
    cmax = max(C_in, C_out)
    per_lane = (bytes_mm * (3 * C_in + K_live * cmax + C_out)   # mm-dtype slabs
                + 4 * (5 * C_out))                              # f32 acc/h/o/res/out
    per_batch = per_lane * L
    cands = [bt for bt in range(1, B + 1)
             if B % bt == 0 and (bt == B or (bt * L) % _LANE_ALIGN == 0)]
    fitting = [bt for bt in cands if bt * per_batch <= budget_bytes]
    if not fitting:
        return min(cands)                   # smallest legal tile; may still spill
    multi = [bt for bt in fitting if bt < B]
    return max(multi) if multi else max(fitting)


def _prep_conv_weight(w, k_dead, fuse, dtype):
    """w: (C_out, C_in, K) PyTorch Conv1d layout; drop dead taps, reshape."""
    C_out = w.shape[0]
    w = w[:, :, k_dead:]                                        # prune dead taps
    if fuse:
        return jnp.transpose(w, (0, 2, 1)).reshape(C_out, -1).astype(dtype)
    return jnp.transpose(w, (2, 0, 1)).astype(dtype)            # (K_live, C_out, C)


def _full_spec(shape):
    n = len(shape)
    return pl.BlockSpec(shape, lambda *idx: (0,) * n)


# ---------------------------------------------------------------------------
# Public wrapper.
# ---------------------------------------------------------------------------
def temporal_block_forward(x, w1, b1, w2, b2, wd=None, bd=None, *,
                           kernel_size, dilation, padding,
                           compute_dtype=jnp.bfloat16, out_dtype=jnp.float32,
                           batch_tile=None, fuse_taps=None,
                           channel_major_io=False, batch=None):
    """TemporalBlock forward (eval mode).

    x  : (B, C_in, L) f32, or (C_in, B*L) if channel_major_io=True (pass batch=B).
    w1 : (C_out, C_in, K), w2: (C_out, C_out, K) effective (weight-norm folded).
    wd : (C_out, C_in) 1x1 downsample or None (identity residual, C_in == C_out).
    compute_dtype: MXU operand dtype (bf16 default); accumulation & elementwise
    stay f32.  NOTE: the residual branch sees compute_dtype-rounded x; pass
    compute_dtype=f32 if bit-level skip-path fidelity is required.
    """
    if channel_major_io:
        assert batch is not None, "channel_major_io=True requires batch="
        C_in, BL = x.shape
        B = batch
        L = BL // B
        assert B * L == BL
        xf = x.reshape(C_in, B * L).astype(compute_dtype)
    else:
        B, C_in, L = x.shape
        xf = jnp.transpose(x, (1, 0, 2)).reshape(C_in, B * L).astype(compute_dtype)

    C_out, w_cin, K = w1.shape
    assert w_cin == C_in and K == kernel_size
    # Standard TCN: chomp(padding) after symmetric pad == pure causal left pad.
    assert padding == dilation * (kernel_size - 1), \
        "TemporalBlock assumes padding == dilation*(kernel_size-1)"
    has_downsample = wd is not None
    if not has_downsample:
        assert C_in == C_out, "identity residual requires C_in == C_out"

    # Dead-tap pruning: taps whose causal shift >= L never touch real data.
    k_dead = sum(1 for k in range(K) if (K - 1 - k) * dilation >= L)
    K_live = K - k_dead
    assert K_live >= 1

    # Fused im2col only when the per-conv contraction is shallow.
    fuse1 = (K_live * C_in < 128) if fuse_taps is None else fuse_taps
    fuse2 = (K_live * C_out < 128) if fuse_taps is None else fuse_taps

    bytes_mm = jnp.dtype(compute_dtype).itemsize
    vmem_limit = _vmem_limit_bytes()
    if batch_tile is None:
        Bt = _pick_batch_tile(B, L, C_in, C_out, K_live, bytes_mm, vmem_limit // 2)
    else:
        Bt = batch_tile
        assert B % Bt == 0, "batch_tile must divide B"
        assert Bt == B or (Bt * L) % 128 == 0, \
            "folded lane tile (Bt*L) must be 128-aligned (256 preferred on v6e/v7x)"
    grid = (B // Bt,)

    w1f = _prep_conv_weight(w1, k_dead, fuse1, compute_dtype)
    w2f = _prep_conv_weight(w2, k_dead, fuse2, compute_dtype)
    bd_col = bd if (has_downsample and bd is not None) else jnp.zeros_like(b1)
    bias = jnp.stack([b1, b2, bd_col], axis=1).astype(jnp.float32)   # (C_out, 3)

    operands = [xf, w1f, w2f]
    in_specs = [
        pl.BlockSpec((C_in, Bt * L), lambda i: (0, i)),   # activations (lane-tiled)
        _full_spec(w1f.shape),                            # conv1 taps (DMA'd once)
        _full_spec(w2f.shape),                            # conv2 taps
    ]
    if has_downsample:
        operands.append(wd.astype(compute_dtype))
        in_specs.append(_full_spec((C_out, C_in)))
    operands.append(bias)
    in_specs.append(_full_spec((C_out, 3)))

    kernel = functools.partial(
        _temporal_block_kernel, K=K_live, dilation=dilation, L=L,
        fuse1=fuse1, fuse2=fuse2, has_downsample=has_downsample)

    out = pl.pallas_call(
        kernel,
        out_shape=jax.ShapeDtypeStruct((C_out, B * L), out_dtype),
        grid_spec=pltpu.PrefetchScalarGridSpec(
            num_scalar_prefetch=0,
            grid=grid,
            in_specs=in_specs,
            out_specs=pl.BlockSpec((C_out, Bt * L), lambda i: (0, i)),
        ),
        compiler_params=pltpu.CompilerParams(
            dimension_semantics=("parallel",),
            vmem_limit_bytes=vmem_limit),
    )(*operands)

    if channel_major_io:
        return out                                               # (C_out, B*L)
    return jnp.transpose(out.reshape(C_out, B, L), (1, 0, 2))    # (B, C_out, L)


# ---------------------------------------------------------------------------
# Helpers: weight_norm re-parameterization + pure-JAX reference.
# ---------------------------------------------------------------------------
def weight_norm_effective(v, g):
    """nn.utils.weight_norm (dim=0): w = g * v / ||v||, norm over (in, k) per out-ch."""
    norm = jnp.sqrt(jnp.sum(v * v, axis=(1, 2), keepdims=True))
    return g.reshape(-1, 1, 1) * v / norm


def temporal_block_reference(x, w1, b1, w2, b2, wd=None, bd=None, *,
                             dilation, padding):
    def conv_chomp(inp, w, b):
        y = lax.conv_general_dilated(
            inp, w, window_strides=(1,), padding=[(padding, padding)],
            rhs_dilation=(dilation,), dimension_numbers=("NCH", "OIH", "NCH"))
        y = y + b[None, :, None]
        return y if padding == 0 else y[:, :, :-padding]          # Chomp1d
    h = jnp.maximum(conv_chomp(x, w1, b1), 0.0)
    o = jnp.maximum(conv_chomp(h, w2, b2), 0.0)
    if wd is None:
        res = x
    else:
        res = jnp.einsum("oc,bcl->bol", wd, x) + bd[None, :, None]
    return jnp.maximum(o + res, 0.0)


# ---------------------------------------------------------------------------
# Main: deterministic synthetic parameters + correctness checks.
# ---------------------------------------------------------------------------
if __name__ == "__main__":
    jax.config.update("jax_default_matmul_precision", "highest")
    key = jax.random.PRNGKey(0)

    # ---------------- Test A: downsample residual, fused-tap path -----------
    B, C_IN, C_OUT, L = 2, 4, 8, 64
    K, DILATION = 3, 2
    PADDING = (K - 1) * DILATION
    k_x, k_v1, k_v2, k_wd, k_b1, k_b2, k_bd, key = jax.random.split(key, 8)

    x = jax.random.normal(k_x, (B, C_IN, L), dtype=jnp.float32)
    v1 = 0.01 * jax.random.normal(k_v1, (C_OUT, C_IN, K), dtype=jnp.float32)
    w1 = weight_norm_effective(v1, jnp.sqrt(jnp.sum(v1 * v1, axis=(1, 2))))
    b1 = 0.1 * jax.random.normal(k_b1, (C_OUT,), dtype=jnp.float32)
    v2 = 0.01 * jax.random.normal(k_v2, (C_OUT, C_OUT, K), dtype=jnp.float32)
    w2 = weight_norm_effective(v2, jnp.sqrt(jnp.sum(v2 * v2, axis=(1, 2))))
    b2 = 0.1 * jax.random.normal(k_b2, (C_OUT,), dtype=jnp.float32)
    wd = 0.01 * jax.random.normal(k_wd, (C_OUT, C_IN), dtype=jnp.float32)
    bd = 0.1 * jax.random.normal(k_bd, (C_OUT,), dtype=jnp.float32)

    ref = temporal_block_reference(x, w1, b1, w2, b2, wd, bd,
                                   dilation=DILATION, padding=PADDING)

    out_f32 = temporal_block_forward(
        x, w1, b1, w2, b2, wd, bd, kernel_size=K, dilation=DILATION,
        padding=PADDING, compute_dtype=jnp.float32)
    out_f32 = jax.block_until_ready(out_f32)
    np.testing.assert_allclose(np.asarray(out_f32), np.asarray(ref),
                               rtol=5e-3, atol=5e-3)

    out_bf16 = temporal_block_forward(          # default bf16 MXU operands
        x, w1, b1, w2, b2, wd, bd, kernel_size=K, dilation=DILATION,
        padding=PADDING)
    out_bf16 = jax.block_until_ready(out_bf16)
    np.testing.assert_allclose(np.asarray(out_bf16), np.asarray(ref),
                               rtol=3e-2, atol=3e-2)

    # ------ Test B: identity residual, per-tap path, tiled grid (>=2 steps) --
    B2, C2, L2 = 8, 64, 64
    K2, DIL2 = 3, 4
    PAD2 = (K2 - 1) * DIL2
    k_x2, k_w1, k_w2, k_b1b, k_b2b, key = jax.random.split(key, 6)
    x2 = jax.random.normal(k_x2, (B2, C2, L2), dtype=jnp.float32)
    w1b = 0.01 * jax.random.normal(k_w1, (C2, C2, K2), dtype=jnp.float32)
    b1b = 0.1 * jax.random.normal(k_b1b, (C2,), dtype=jnp.float32)
    w2b = 0.01 * jax.random.normal(k_w2, (C2, C2, K2), dtype=jnp.float32)
    b2b = 0.1 * jax.random.normal(k_b2b, (C2,), dtype=jnp.float32)

    ref2 = temporal_block_reference(x2, w1b, b1b, w2b, b2b,
                                    dilation=DIL2, padding=PAD2)

    out2_f32 = temporal_block_forward(
        x2, w1b, b1b, w2b, b2b, kernel_size=K2, dilation=DIL2, padding=PAD2,
        compute_dtype=jnp.float32, batch_tile=4)      # grid=(2,), 256-lane tiles
    out2_f32 = jax.block_until_ready(out2_f32)
    np.testing.assert_allclose(np.asarray(out2_f32), np.asarray(ref2),
                               rtol=5e-3, atol=5e-3)

    out2_bf16 = temporal_block_forward(
        x2, w1b, b1b, w2b, b2b, kernel_size=K2, dilation=DIL2, padding=PAD2,
        batch_tile=4)
    out2_bf16 = jax.block_until_ready(out2_bf16)
    np.testing.assert_allclose(np.asarray(out2_bf16), np.asarray(ref2),
                               rtol=3e-2, atol=3e-2)

    # channel-major interchange format (stacked-TCN plumbing)
    x2_cm = jnp.transpose(x2, (1, 0, 2)).reshape(C2, B2 * L2)
    out2_cm = temporal_block_forward(
        x2_cm, w1b, b1b, w2b, b2b, kernel_size=K2, dilation=DIL2, padding=PAD2,
        compute_dtype=jnp.float32, batch_tile=4, channel_major_io=True, batch=B2)
    out2_cm = jax.block_until_ready(out2_cm)
    ref2_cm = jnp.transpose(ref2, (1, 0, 2)).reshape(C2, B2 * L2)
    np.testing.assert_allclose(np.asarray(out2_cm), np.asarray(ref2_cm),
                               rtol=5e-3, atol=5e-3)

    # --------- Test C: deep dilation -> dead-tap pruning, identity residual --
    B3, C3, L3 = 2, 4, 64
    K3, DIL3 = 3, 32
    PAD3 = (K3 - 1) * DIL3                       # = 64 >= L3 -> one dead tap
    k_x3, k_w13, k_w23, k_b13, k_b23, key = jax.random.split(key, 6)
    x3 = jax.random.normal(k_x3, (B3, C3, L3), dtype=jnp.float32)
    w13 = 0.01 * jax.random.normal(k_w13, (C3, C3, K3), dtype=jnp.float32)
    b13 = 0.1 * jax.random.normal(k_b13, (C3,), dtype=jnp.float32)
    w23 = 0.01 * jax.random.normal(k_w23, (C3, C3, K3), dtype=jnp.float32)
    b23 = 0.1 * jax.random.normal(k_b23, (C3,), dtype=jnp.float32)

    ref3 = temporal_block_reference(x3, w13, b13, w23, b23,
                                    dilation=DIL3, padding=PAD3)
    out3 = temporal_block_forward(
        x3, w13, b13, w23, b23, kernel_size=K3, dilation=DIL3, padding=PAD3,
        compute_dtype=jnp.float32)
    out3 = jax.block_until_ready(out3)
    np.testing.assert_allclose(np.asarray(out3), np.asarray(ref3),
                               rtol=5e-3, atol=5e-3)

    print("KERNEL_OK")
</pallas_src>

<mosaic_0001>
module attributes {stable_mosaic.version = 11 : i64} {
  func.func @_temporal_block_kernel(%arg0: i32, %arg1: memref<4x128xf32, #tpu.memory_space<vmem>>, %arg2: memref<8x12xf32, #tpu.memory_space<vmem>>, %arg3: memref<8x24xf32, #tpu.memory_space<vmem>>, %arg4: memref<8x4xf32, #tpu.memory_space<vmem>>, %arg5: memref<8x3xf32, #tpu.memory_space<vmem>>, %arg6: memref<8x128xf32, #tpu.memory_space<vmem>>) attributes {dimension_semantics = [#tpu.dimension_semantics<parallel>], iteration_bounds = array<i64: 1>, scalar_prefetch = 0 : i64, scratch_operands = 0 : i64, tpu.core_type = #tpu.core_type<tc>, window_params = [{transform_indices = @transform_0, window_bounds = array<i64: 4, 128>}, {pipeline_mode = #tpu.pipeline_mode<synchronous>, transform_indices = @transform_1, window_bounds = array<i64: 8, 12>}, {pipeline_mode = #tpu.pipeline_mode<synchronous>, transform_indices = @transform_2, window_bounds = array<i64: 8, 24>}, {pipeline_mode = #tpu.pipeline_mode<synchronous>, transform_indices = @transform_3, window_bounds = array<i64: 8, 4>}, {pipeline_mode = #tpu.pipeline_mode<synchronous>, transform_indices = @transform_4, window_bounds = array<i64: 8, 3>}, {transform_indices = @transform_5, window_bounds = array<i64: 8, 128>}]} {
    %c0 = arith.constant 0 : index
    %c0_0 = arith.constant 0 : index
    %0 = vector.load %arg1[%c0, %c0_0] : memref<4x128xf32, #tpu.memory_space<vmem>>, vector<4x128xf32>
    %1 = tpu.iota {dimensions = array<i32: 1>} : vector<1x128xi32>
    %c64_i32 = arith.constant 64 : i32
    %c0_i32 = arith.constant 0 : i32
    %2 = arith.cmpi eq, %c64_i32, %c0_i32 : i32
    %c1_i32 = arith.constant 1 : i32
    %3 = arith.select %2, %c1_i32, %c64_i32 : i32
    %4 = vector.broadcast %3 : i32 to vector<1x128xi32>
    %5 = arith.remsi %1, %4 : vector<1x128xi32>
    %c0_i32_1 = arith.constant 0 : i32
    %6 = vector.broadcast %c0_i32_1 : i32 to vector<1x128xi32>
    %7 = arith.cmpi ne, %5, %6 : vector<1x128xi32>
    %c0_i32_2 = arith.constant 0 : i32
    %8 = vector.broadcast %c0_i32_2 : i32 to vector<1x128xi32>
    %9 = arith.cmpi slt, %5, %8 : vector<1x128xi32>
    %c0_i32_3 = arith.constant 0 : i32
    %10 = arith.cmpi slt, %3, %c0_i32_3 : i32
    %11 = vector.broadcast %10 : i1 to vector<1x128xi1>
    %12 = vector.broadcast %11 : vector<1x128xi1> to vector<1x128xi1>
    %13 = arith.xori %9, %12 : vector<1x128xi1>
    %14 = arith.andi %13, %7 : vector<1x128xi1>
    %15 = vector.broadcast %3 : i32 to vector<1x128xi32>
    %16 = arith.addi %5, %15 : vector<1x128xi32>
    %17 = arith.select %14, %16, %5 : vector<1x128xi1>, vector<1x128xi32>
    %c4_i32 = arith.constant 4 : i32
    %18 = vector.broadcast %c4_i32 : i32 to vector<1x128xi32>
    %19 = arith.cmpi sge, %17, %18 : vector<1x128xi32>
    %c2_i32 = arith.constant 2 : i32
    %20 = vector.broadcast %c2_i32 : i32 to vector<1x128xi32>
    %21 = arith.cmpi sge, %17, %20 : vector<1x128xi32>
    %c0_4 = arith.constant 0 : index
    %c0_5 = arith.constant 0 : index
    %22 = vector.load %arg5[%c0_4, %c0_5] : memref<8x3xf32, #tpu.memory_space<vmem>>, vector<8x3xf32>
    %23 = vector.extract_strided_slice %22 {offsets = [0, 0], sizes = [8, 1], strides = [1, 1]} : vector<8x3xf32> to vector<8x1xf32>
    %24 = vector.extract_strided_slice %22 {offsets = [0, 1], sizes = [8, 1], strides = [1, 1]} : vector<8x3xf32> to vector<8x1xf32>
    %25 = vector.extract_strided_slice %22 {offsets = [0, 2], sizes = [8, 1], strides = [1, 1]} : vector<8x3xf32> to vector<8x1xf32>
    %c4_i32_6 = arith.constant 4 : i32
    %26 = tpu.dynamic_rotate %0 by %c4_i32_6 dim 1 : vector<4x128xf32>, i32 -> vector<4x128xf32>
    %cst = arith.constant 0.000000e+00 : f32
    %27 = vector.broadcast %cst : f32 to vector<4x128xf32>
    %28 = vector.shape_cast %19 : vector<1x128xi1> to vector<1x128xi1>
    %29 = vector.broadcast %28 : vector<1x128xi1> to vector<4x128xi1>
    %30 = arith.select %29, %26, %27 : vector<4x128xi1>, vector<4x128xf32>
    %c2_i32_7 = arith.constant 2 : i32
    %31 = tpu.dynamic_rotate %0 by %c2_i32_7 dim 1 : vector<4x128xf32>, i32 -> vector<4x128xf32>
    %cst_8 = arith.constant 0.000000e+00 : f32
    %32 = vector.broadcast %cst_8 : f32 to vector<4x128xf32>
    %33 = vector.shape_cast %21 : vector<1x128xi1> to vector<1x128xi1>
    %34 = vector.broadcast %33 : vector<1x128xi1> to vector<4x128xi1>
    %35 = arith.select %34, %31, %32 : vector<4x128xi1>, vector<4x128xf32>
    %36 = tpu.concatenate %30, %35, %0 in 0 : vector<4x128xf32>, vector<4x128xf32>, vector<4x128xf32> -> vector<12x128xf32>
    %c0_9 = arith.constant 0 : index
    %c0_10 = arith.constant 0 : index
    %37 = vector.load %arg2[%c0_9, %c0_10] : memref<8x12xf32, #tpu.memory_space<vmem>>, vector<8x12xf32>
    %cst_11 = arith.constant dense<0.000000e+00> : vector<8x128xf32>
    %38 = tpu.matmul %37, %36, %cst_11 {dimension_numbers = #tpu.dot_dimension_numbers<[1], [0], [0], [1], [0, 0, 1, 1], [], []>, precision = #tpu.contract_precision<fp32>} : vector<8x12xf32>, vector<12x128xf32>, vector<8x128xf32> -> vector<8x128xf32>
    %39 = vector.broadcast %23 : vector<8x1xf32> to vector<8x128xf32>
    %40 = arith.addf %38, %39 : vector<8x128xf32>
    %cst_12 = arith.constant 0.000000e+00 : f32
    %41 = vector.broadcast %cst_12 : f32 to vector<8x128xf32>
    %42 = arith.maximumf %40, %41 : vector<8x128xf32>
    %c4_i32_13 = arith.constant 4 : i32
    %43 = tpu.dynamic_rotate %42 by %c4_i32_13 dim 1 : vector<8x128xf32>, i32 -> vector<8x128xf32>
    %cst_14 = arith.constant 0.000000e+00 : f32
    %44 = vector.broadcast %cst_14 : f32 to vector<8x128xf32>
    %45 = vector.shape_cast %19 : vector<1x128xi1> to vector<1x128xi1>
    %46 = vector.broadcast %45 : vector<1x128xi1> to vector<8x128xi1>
    %47 = arith.select %46, %43, %44 : vector<8x128xi1>, vector<8x128xf32>
    %c2_i32_15 = arith.constant 2 : i32
    %48 = tpu.dynamic_rotate %42 by %c2_i32_15 dim 1 : vector<8x128xf32>, i32 -> vector<8x128xf32>
    %cst_16 = arith.constant 0.000000e+00 : f32
    %49 = vector.broadcast %cst_16 : f32 to vector<8x128xf32>
    %50 = vector.shape_cast %21 : vector<1x128xi1> to vector<1x128xi1>
    %51 = vector.broadcast %50 : vector<1x128xi1> to vector<8x128xi1>
    %52 = arith.select %51, %48, %49 : vector<8x128xi1>, vector<8x128xf32>
    %53 = tpu.concatenate %47, %52, %42 in 0 : vector<8x128xf32>, vector<8x128xf32>, vector<8x128xf32> -> vector<24x128xf32>
    %c0_17 = arith.constant 0 : index
    %c0_18 = arith.constant 0 : index
    %54 = vector.load %arg3[%c0_17, %c0_18] : memref<8x24xf32, #tpu.memory_space<vmem>>, vector<8x24xf32>
    %cst_19 = arith.constant dense<0.000000e+00> : vector<8x128xf32>
    %55 = tpu.matmul %54, %53, %cst_19 {dimension_numbers = #tpu.dot_dimension_numbers<[1], [0], [0], [1], [0, 0, 1, 1], [], []>, precision = #tpu.contract_precision<fp32>} : vector<8x24xf32>, vector<24x128xf32>, vector<8x128xf32> -> vector<8x128xf32>
    %56 = vector.broadcast %24 : vector<8x1xf32> to vector<8x128xf32>
    %57 = arith.addf %55, %56 : vector<8x128xf32>
    %cst_20 = arith.constant 0.000000e+00 : f32
    %58 = vector.broadcast %cst_20 : f32 to vector<8x128xf32>
    %59 = arith.maximumf %57, %58 : vector<8x128xf32>
    %c0_21 = arith.constant 0 : index
    %c0_22 = arith.constant 0 : index
    %60 = vector.load %arg4[%c0_21, %c0_22] : memref<8x4xf32, #tpu.memory_space<vmem>>, vector<8x4xf32>
    %cst_23 = arith.constant dense<0.000000e+00> : vector<8x128xf32>
    %61 = tpu.matmul %60, %0, %cst_23 {dimension_numbers = #tpu.dot_dimension_numbers<[1], [0], [0], [1], [0, 0, 1, 1], [], []>, precision = #tpu.contract_precision<fp32>} : vector<8x4xf32>, vector<4x128xf32>, vector<8x128xf32> -> vector<8x128xf32>
    %62 = vector.broadcast %25 : vector<8x1xf32> to vector<8x128xf32>
    %63 = arith.addf %61, %62 : vector<8x128xf32>
    %64 = arith.addf %59, %63 : vector<8x128xf32>
    %cst_24 = arith.constant 0.000000e+00 : f32
    %65 = vector.broadcast %cst_24 : f32 to vector<8x128xf32>
    %66 = arith.maximumf %64, %65 : vector<8x128xf32>
    %c0_25 = arith.constant 0 : index
    %c0_26 = arith.constant 0 : index
    %67 = vector.load %arg6[%c0_25, %c0_26] : memref<8x128xf32, #tpu.memory_space<vmem>>, vector<8x128xf32>
    tpu.vector_store %arg6[%c0_25, %c0_26], %66 {strides = array<i32>} : memref<8x128xf32, #tpu.memory_space<vmem>>, vector<8x128xf32>,
    return
  }
  func.func @transform_0(%arg0: i32) -> (i32, i32) {
    %c0_i32 = arith.constant 0 : i32
    %c0_i32_0 = arith.constant 0 : i32
    return %c0_i32, %arg0 : i32, i32
  }
  func.func @transform_1(%arg0: i32) -> (i32, i32) {
    %c0_i32 = arith.constant 0 : i32
    %c0_i32_0 = arith.constant 0 : i32
    %c0_i32_1 = arith.constant 0 : i32
    return %c0_i32, %c0_i32_0 : i32, i32
  }
  func.func @transform_2(%arg0: i32) -> (i32, i32) {
    %c0_i32 = arith.constant 0 : i32
    %c0_i32_0 = arith.constant 0 : i32
    %c0_i32_1 = arith.constant 0 : i32
    return %c0_i32, %c0_i32_0 : i32, i32
  }
  func.func @transform_3(%arg0: i32) -> (i32, i32) {
    %c0_i32 = arith.constant 0 : i32
    %c0_i32_0 = arith.constant 0 : i32
    %c0_i32_1 = arith.constant 0 : i32
    return %c0_i32, %c0_i32_0 : i32, i32
  }
  func.func @transform_4(%arg0: i32) -> (i32, i32) {
    %c0_i32 = arith.constant 0 : i32
    %c0_i32_0 = arith.constant 0 : i32
    %c0_i32_1 = arith.constant 0 : i32
    return %c0_i32, %c0_i32_0 : i32, i32
  }
  func.func @transform_5(%arg0: i32) -> (i32, i32) {
    %c0_i32 = arith.constant 0 : i32
    %c0_i32_0 = arith.constant 0 : i32
    return %c0_i32, %arg0 : i32, i32
  }
}

</mosaic_0001>

<bundles_post_ra>
// kernel: tpu_custom_call.1
= control target key start
LH: loop header
LB: loop body
LE: loop exit
PB: predicated region body
PF: predicated region fallthrough
CT: control target
= control target key end

     0   :  { %s1762_s20 = smov 2   ;;  %v1763_v1 = vmov 0.0|0.0   ;;  %vm1764_vm0 = vmmov 0   ;;  %v1765_v2 = vmov 0.0   ;;  %s1939_s0 = inlined_call_operand.vmem [shape: f32[4,128], index: 0, kind: input, shape index: {}]   ;;  %s1940_s1 = inlined_call_operand.vmem [shape: f32[8,12], index: 1, kind: input, shape index: {}]   ;;  %s1941_s2 = inlined_call_operand.vmem [shape: f32[8,24], index: 2, kind: input, shape index: {}]   ;;  %s1942_s3 = inlined_call_operand.vmem [shape: f32[8,4], index: 3, kind: input, shape index: {}]   ;;  %s1943_s4 = inlined_call_operand.vmem [shape: f32[8,3], index: 4, kind: input, shape index: {}]   ;;  %s1944_s5 = inlined_call_operand.hbm [shape: f32[8,128], index: 5, kind: output, shape index: {}]  }
   0x1   :  { %v21_v0 = vld [vmem:[%s1939_s0] sm:$0xf]  ;;  %1667 = vmatprep.subr.bf16.mxu0 %v1763_v1  ;;  %1545 = vmatprep.mubr.msk.f32.mxu0 %vm1764_vm0, %v1765_v2 }
   0x2   :  { %44 = vrot.lane.b32.xlu0 %v21_v0, %s1762_s20  ;;  %1685 = vmatprep.subr.bf16.mxu1 %v1763_v1 }
   0x3   :  { %10 = vsyncpa [#allocation3], 0  ;;  %1589 = vmatprep.mubr.msk.f32.mxu1 %vm1764_vm0, %v1765_v2  ;;  %s1766_s21 = smov 4   ;;  %v1815_v3 = vld [vmem:[%s1943_s4] sm:$0xff]  ;;  %v1767_v4 = vmov 0   ;;  %v22_v5 = vlaneseq  ;;  %vm60_vm1 = vcmask 97280  }
   0x4   :  { %1734 = vset.pattern.permute.xlu1 %v1767_v4  ;;  %v54_v6 = vld [vmem:[%s1940_s1] sm:$0xff]  ;;  %vm52_vm2 = vcmask 1043456   ;;  %vm1020_vm5 = vcmask 31744   ;;  %v1768_v50 = vmov 2   ;;  %v1769_v51 = vmov 1  }
   0x5   :  { %57 = vperm.xlu1 %1734, %v1815_v3   ;;  %v23_v7 = vand.u32 127, %v22_v5  ;;  %v62_v8 = vsel %vm60_vm1, %v54_v6, 0  ;;  %v65_v9 = vsel %vm52_vm2, %v21_v0, 0  ;;  %v1015_v43 = vld [vmem:[%s1942_s3] sm:$0xff]  ;;  %1736 = vset.pattern.permute.xlu0 %v1769_v51  ;;  %vm538_vm6 = vcmask 195584  }
   0x6   :  { %39 = vrot.lane.b32.xlu0 %v21_v0, %s1766_s21  ;;  %v134_v11 = vand.u32 4294901760, %v62_v8  ;;  %v1822_v12 = vand.u32 4294901760, %v65_v9  ;;  %v1022_v44 = vsel %vm1020_vm5, %v1015_v43, 0  ;;  %v533_v52 = vld [vmem:[%s1941_s2] sm:$0xff]  ;;  %s1770_s2 = smov [#allocation2]  }
   0x7   :  { %v28_v10 = vand.u32 63, %v23_v7  ;;  %v1873_v45 = vand.u32 4294901760, %v1022_v44  ;;  %v540_v53 = vsel %vm538_vm6, %v533_v52, 0  ;;  %s1479_s26 = sshll.u32 %s1770_s2, 4  ;;  %s1480_s26 = int_to_ptr.vmem [resolvable:$true] %s1479_s26 }
   0x8   :  { %v135_v14 = vsub.f32 %v62_v8, %v134_v11  ;;  %v1829_v16 = vsub.f32 %v65_v9, %v1822_v12  ;;  %v610_v54 = vand.u32 4294901760, %v540_v53  ;;  %s1738_s27 = scalar_lea.vmem %s1480_s26, 128  ;;  %p1743_p1 = scmp.lt.s32.totalorder %s1480_s26, %s1480_s26 }
   0x9   :  { %vm1824_vm3 = vcmp.ge.s32.totalorder %v28_v10, 2  ;;  %vm1833_vm4 = vcmp.ge.s32.totalorder %v28_v10, 4  ;;  %v1091_v46 = vsub.f32 %v1022_v44, %v1873_v45  ;;  %1735 = vset.pattern.permute.xlu1 %v1768_v50  ;;  %p1739_p0 = scmp.ne.s32.totalorder %s1480_s26, %s1738_s27  ;;  %p1744_p2 = scmp.lt.s32.totalorder %s1738_s27, %s1738_s27 }
   0xa   :  { %v136_v19 = vand.u32 4294901760, %v135_v14  ;;  %v1838_v22 = vand.u32 4294901760, %v1829_v16  ;;  %v611_v55 = vsub.f32 %v540_v53, %v610_v54 }
   0xb   :  { %v1092_v47 = vand.u32 4294901760, %v1091_v46  ;;  %p1745_p3 = por %p1744_p2, %p1743_p1 }
   0xc   :  { %v137_v25 = vsub.f32 %v135_v14, %v136_v19  ;;  %v155_v29 = vsub.f32 %v1829_v16, %v1838_v22  ;;  %v612_v56 = vand.u32 4294901760, %v611_v55 }
   0xd   :  { %v1093_v48 = vsub.f32 %v1091_v46, %v1092_v47  ;;  %p1746_p4 = pnand %p1745_p3, %p1739_p0 }
   0xe   :  { %v138_v30 = vand.u32 4294901760, %v137_v25  ;;  %v156_v33 = vand.u32 4294901760, %v155_v29  ;;  %v613_v0 = vsub.f32 %v611_v55, %v612_v56 }
   0xf   :  { %v1094_v49 = vand.u32 4294901760, %v1093_v48 }
  0x10   :  { %v614_v9 = vand.u32 4294901760, %v613_v0 }
  0x74   :  { %v45_v15 = vpop.permute.xlu0 %44 }
  0x75   :  { %v48_v17 = vsel %vm1824_vm3, %v45_v15, 0.0 }
  0x76   :  { %v50_v20 = vrot.slane %v48_v17, 4 }
  0x78   :  { %v40_v21 = vpop.permute.xlu0 %39 }
  0x79   :  { %v43_v23 = vsel %vm1833_vm4, %v40_v21, 0.0 }
  0x7a   :  { %v53_v24 = vsel %vm52_vm2, %v43_v23, %v50_v20 }
  0x7b   :  { %v68_v26 = vand.u32 4294901760, %v53_v24 }
  0x7d   :  { %v146_v27 = vsub.f32 %v53_v24, %v68_v26  ;;  %v1668_v28 = vpack.c.bf16 %v1822_v12, %v68_v26 }
  0x7f   :  { %v147_v31 = vand.u32 4294901760, %v146_v27  ;;  %1669 = vmatpush3.bf16.msra.mxu0 %v1668_v28  ;;  %v1674_v36 = vpack.c.bf16 %v1829_v16, %v146_v27 }
  0x80   :  { %1670 = vmatprep.subr.bf16.mxu0 %v1763_v1 }
  0x81   :  { %v148_v32 = vsub.f32 %v146_v27, %v147_v31  ;;  %v1680_v37 = vpack.c.bf16 %v1838_v22, %v147_v31 }
  0x82   :  { %1546 = vmatmul.mubr.f32.vlgmr.msra.gmra.mrb[0].mxu0 %v138_v30 }
  0x83   :  { %v149_v34 = vand.u32 4294901760, %v148_v32  ;;  %1552 = vmatprep.mubr.msk.f32.mxu0 %vm1764_vm0, %v1765_v2 }
  0x84   :  { %v58_v38 = vpop.permute.xlu1 %57 }
  0x85   :  { %v1671_v35 = vpack.c.bf16 %v156_v33, %v149_v34 }
  0x87   :  { %1672 = vmatpush3.bf16.msra.mxu0 %v1671_v35 }
  0x88   :  { %1673 = vmatprep.subr.bf16.mxu0 %v1763_v1 }
  0x8a   :  { %1553 = vmatmul.mubr.f32.vlgmr.msra.gmra.mrb[0].mxu0 %v134_v11 }
  0x8b   :  { %1675 = vmatpush3.bf16.msra.mxu0 %v1674_v36  ;;  %1559 = vmatprep.mubr.msk.f32.mxu0 %vm1764_vm0, %v1765_v2 }
  0x8c   :  { %1676 = vmatprep.subr.bf16.mxu0 %v1763_v1 }
  0x92   :  { %1560 = vmatmul.mubr.f32.vlgmr.msra.gmra.mrb[0].mxu0 %v135_v14 }
  0x93   :  { %1678 = vmatpush3.bf16.msra.mxu0 %v1668_v28  ;;  %1566 = vmatprep.mubr.msk.f32.mxu0 %vm1764_vm0, %v1765_v2 }
  0x94   :  { %1679 = vmatprep.subr.bf16.mxu0 %v1763_v1 }
  0x9a   :  { %1567 = vmatmul.mubr.f32.vlgmr.msra.gmra.mrb[0].mxu0 %v136_v19 }
  0x9b   :  { %1681 = vmatpush3.bf16.msra.mxu0 %v1680_v37  ;;  %1573 = vmatprep.mubr.msk.f32.mxu0 %vm1764_vm0, %v1765_v2 }
  0x9c   :  { %1682 = vmatprep.subr.bf16.mxu0 %v1763_v1 }
  0xa2   :  { %1574 = vmatmul.mubr.f32.vlgmr.msra.gmra.mrb[0].mxu0 %v134_v11 }
  0xa3   :  { %1684 = vmatpush3.bf16.msra.mxu0 %v1668_v28  ;;  %1580 = vmatprep.mubr.msk.f32.mxu0 %vm1764_vm0, %v1765_v2 }
  0xa4   :  { %1637 = vmatprep.subr.mxu0 %v1765_v2 }
  0xaa   :  { %1581 = vmatmul.mubr.f32.vlgmr.msra.gmra.mrb[0].mxu0 %v134_v11 }
  0xab   :  { %1638 = vmatpush3.msra.mxu0 %v1822_v12  ;;  %1639 = vmatprep.mubr.msk.f32.mxu0 %vm1764_vm0, %v1765_v2 }
  0xac   :  { %1642 = vmatprep.subr.mxu0 %v1765_v2 }
  0xae   :  { %1640 = vmatmul.mubr.f32.vlgmr.msra.gmra.mrb[2].mxu0 %v1094_v49 }
  0xaf   :  { %1643 = vmatpush3.msra.mxu0 %v156_v33  ;;  %1644 = vmatprep.mubr.msk.f32.mxu0 %vm1764_vm0, %v1765_v2 }
  0xb0   :  { %1647 = vmatprep.subr.mxu0 %v1765_v2 }
  0xb2   :  { %1645 = vmatmul.mubr.f32.vlgmr.msra.gmra.mrb[4].mxu0 %v1873_v45 }
  0xb3   :  { %1648 = vmatpush3.msra.mxu0 %v1829_v16  ;;  %1649 = vmatprep.mubr.msk.f32.mxu0 %vm1764_vm0, %v1765_v2 }
  0xb4   :  { %1652 = vmatprep.subr.mxu0 %v1765_v2 }
  0xb6   :  { %1650 = vmatmul.mubr.f32.vlgmr.msra.gmra.mrb[6].mxu0 %v1091_v46 }
  0xb7   :  { %1653 = vmatpush3.msra.mxu0 %v1822_v12  ;;  %1654 = vmatprep.mubr.msk.f32.mxu0 %vm1764_vm0, %v1765_v2 }
  0xb8   :  { %1662 = vmatprep.subr.mxu0 %v1765_v2 }
  0xba   :  { %1655 = vmatmul.mubr.f32.vlgmr.msra.gmra.mrb[8].mxu0 %v1092_v47 }
  0xbb   :  { %1663 = vmatpush3.msra.mxu0 %v1822_v12  ;;  %1664 = vmatprep.mubr.msk.f32.mxu0 %vm1764_vm0, %v1765_v2 }
  0xbe   :  { %1665 = vmatmul.mubr.f32.vlgmr.msra.gmra.mrb[10].mxu0 %v1873_v45 }
 0x17d   :  { %v522_v39 = vpop.f32.mrb[0].mxu0 }
 0x17e   :  { %v1703_v40 = vadd.f32 %v522_v39, %v58_v38  ;;  %v1582_v41 = vpop.f32.mrb[1].mxu0 }
 0x180   :  { %v526_v42 = vmax.f32 %v1703_v40, 0.0 }
 0x182   :  { %530 = vrot.lane.b32.xlu0 %v526_v42, %s1762_s20  ;;  %527 = vrot.lane.b32.xlu1 %v526_v42, %s1766_s21  ;;  %v549_v59 = vand.u32 4294901760, %v526_v42 }
 0x184   :  { %v636_v6 = vsub.f32 %v526_v42, %v549_v59 }
 0x186   :  { %1017 = vperm.xlu1 %1735, %v1815_v3   ;;  %535 = vperm.xlu0 %1736, %v1815_v3   ;;  %v637_v12 = vand.u32 4294901760, %v636_v6 }
 0x188   :  { %v638_v16 = vsub.f32 %v636_v6, %v637_v12 }
 0x18a   :  { %1737 = vset.pattern.permute.xlu0 %v1768_v50  ;;  %v639_v17 = vand.u32 4294901760, %v638_v16 }
 0x1f4   :  { %v531_v57 = vpop.permute.xlu0 %530  ;;  %v528_v58 = vpop.permute.xlu1 %527 }
 0x1f5   :  { %v532_v60 = vsel %vm1824_vm3, %v531_v57, 0.0  ;;  %v529_v61 = vsel %vm1833_vm4, %v528_v58, 0.0 }
 0x1f6   :  { %v546_v62 = vand.u32 4294901760, %v532_v60  ;;  %v543_v63 = vand.u32 4294901760, %v529_v61 }
 0x1f8   :  { %v629_v3 = vsub.f32 %v532_v60, %v546_v62  ;;  %v1686_v4 = vpack.c.bf16 %v546_v62, %v543_v63  ;;  %v622_v5 = vsub.f32 %v529_v61, %v543_v63 }
 0x1fa   :  { %v630_v7 = vand.u32 4294901760, %v629_v3  ;;  %v623_v8 = vand.u32 4294901760, %v622_v5  ;;  %1687 = vmatpush3.bf16.msra.mxu1 %v1686_v4  ;;  %v1692_v18 = vpack.c.bf16 %v629_v3, %v622_v5 }
 0x1fb   :  { %1587 = vmatprep.subr.mxu1 %v1765_v2 }
 0x1fc   :  { %v631_v10 = vsub.f32 %v629_v3, %v630_v7  ;;  %v624_v11 = vsub.f32 %v622_v5, %v623_v8  ;;  %v1698_v19 = vpack.c.bf16 %v630_v7, %v623_v8 }
 0x1fe   :  { %v632_v13 = vand.u32 4294901760, %v631_v10  ;;  %v625_v14 = vand.u32 4294901760, %v624_v11  ;;  %1588 = vmatpush3.msra.mxu1 %v549_v59 }
 0x1ff   :  { %1590 = vmatmul.mubr.f32.vlgmr.msra.gmra.mrb[0].mxu1 %v614_v9  ;;  %1688 = vmatprep.subr.bf16.mxu1 %v1763_v1 }
 0x200   :  { %v1689_v15 = vpack.c.bf16 %v632_v13, %v625_v14  ;;  %1598 = vmatprep.mubr.msk.f32.mxu1 %vm1764_vm0, %v1765_v2 }
 0x202   :  { %1690 = vmatpush3.bf16.msra.mxu1 %v1689_v15 }
 0x203   :  { %1596 = vmatprep.subr.mxu1 %v1765_v2 }
 0x205   :  { %v1018_v20 = vpop.permute.xlu1 %1017  ;;  %v536_v34 = vpop.permute.xlu0 %535 }
 0x206   :  { %1597 = vmatpush3.msra.mxu1 %v639_v17 }
 0x207   :  { %1599 = vmatmul.mubr.f32.vlgmr.msra.gmra.mrb[0].mxu1 %v610_v54  ;;  %1691 = vmatprep.subr.bf16.mxu1 %v1763_v1 }
 0x208   :  { %1693 = vmatpush3.bf16.msra.mxu1 %v1692_v18  ;;  %1607 = vmatprep.mubr.msk.f32.mxu1 %vm1764_vm0, %v1765_v2 }
 0x209   :  { %1605 = vmatprep.subr.mxu1 %v1765_v2 }
 0x20c   :  { %1606 = vmatpush3.msra.mxu1 %v636_v6 }
 0x20d   :  { %1694 = vmatprep.subr.bf16.mxu1 %v1763_v1 }
 0x20f   :  { %1608 = vmatmul.mubr.f32.vlgmr.msra.gmra.mrb[0].mxu1 %v611_v55 }
 0x210   :  { %1696 = vmatpush3.bf16.msra.mxu1 %v1686_v4  ;;  %1616 = vmatprep.mubr.msk.f32.mxu1 %vm1764_vm0, %v1765_v2 }
 0x211   :  { %1614 = vmatprep.subr.mxu1 %v1765_v2 }
 0x214   :  { %1615 = vmatpush3.msra.mxu1 %v549_v59 }
 0x215   :  { %1697 = vmatprep.subr.bf16.mxu1 %v1763_v1 }
 0x217   :  { %1617 = vmatmul.mubr.f32.vlgmr.msra.gmra.mrb[0].mxu1 %v612_v56 }
 0x218   :  { %1699 = vmatpush3.bf16.msra.mxu1 %v1698_v19  ;;  %1625 = vmatprep.mubr.msk.f32.mxu1 %vm1764_vm0, %v1765_v2 }
 0x219   :  { %1623 = vmatprep.subr.mxu1 %v1765_v2 }
 0x21c   :  { %1624 = vmatpush3.msra.mxu1 %v637_v12 }
 0x21d   :  { %1700 = vmatprep.subr.bf16.mxu1 %v1763_v1  ;;  %v1096_v1 = vpop.f32.mrb[2].mxu0 }
 0x21e   :  { %v1097_v21 = vadd.f32 %v1096_v1, %v1018_v20  ;;  %v1641_v23 = vpop.f32.mrb[3].mxu0 }
 0x21f   :  { %1626 = vmatmul.mubr.f32.vlgmr.msra.gmra.mrb[0].mxu1 %v610_v54  ;;  %v1172_v24 = vpop.f32.mrb[4].mxu0 }
 0x220   :  { %1702 = vmatpush3.bf16.msra.mxu1 %v1686_v4  ;;  %1634 = vmatprep.mubr.msk.f32.mxu1 %vm1764_vm0, %v1765_v2  ;;  %v1173_v25 = vadd.f32 %v1172_v24, %v1097_v21  ;;  %v1646_v26 = vpop.f32.mrb[5].mxu0 }
 0x221   :  { %1632 = vmatprep.subr.mxu1 %v1765_v2  ;;  %v1246_v27 = vpop.f32.mrb[6].mxu0 }
 0x222   :  { %v1247_v28 = vadd.f32 %v1246_v27, %v1173_v25  ;;  %v1651_v29 = vpop.f32.mrb[7].mxu0 }
 0x223   :  { %v1320_v30 = vpop.f32.mrb[8].mxu0 }
 0x224   :  { %1633 = vmatpush3.msra.mxu1 %v549_v59  ;;  %v1321_v31 = vadd.f32 %v1320_v30, %v1247_v28  ;;  %v1656_v32 = vpop.f32.mrb[9].mxu0 }
 0x225   :  { %1657 = vmatprep.subr.mxu1 %v1765_v2  ;;  %v1466_v33 = vpop.f32.mrb[10].mxu0 }
 0x227   :  { %1635 = vmatmul.mubr.f32.vlgmr.msra.gmra.mrb[0].mxu1 %v610_v54 }
 0x228   :  { %1658 = vmatpush3.msra.mxu1 %v1838_v22  ;;  %1659 = vmatprep.mubr.msk.f32.mxu1 %vm1764_vm0, %v1765_v2  ;;  %v1666_v22 = vpop.f32.mrb[11].mxu0 }
 0x22b   :  { %1660 = vmatmul.mubr.f32.vlgmr.msra.gmra.mrb[2].mxu1 %v1873_v45 }
 0x2fa   :  { %v1010_v35 = vpop.f32.mrb[0].mxu1 }
 0x2fb   :  { %v1636_v2 = vpop.f32.mrb[1].mxu1  ;;  %v1704_v36 = vadd.f32 %v1010_v35, %v536_v34 }
 0x2fd   :  { %v1014_v40 = vmax.f32 %v1704_v36, 0.0 }
 0x2fe   :  { %v1394_v37 = vpop.f32.mrb[2].mxu1 }
 0x2ff   :  { %v1395_v38 = vadd.f32 %v1394_v37, %v1321_v31  ;;  %v1661_v39 = vpop.f32.mrb[3].mxu1 }
 0x301   :  { %v1467_v41 = vadd.f32 %v1466_v33, %v1395_v38 }
 0x303   :  { %v1470_v42 = vadd.f32 %v1467_v41, %v1014_v40 }
 0x305   :  { %v1471_v43 = vmax.f32 %v1470_v42, 0.0 }
 0x307   :  { %1472 = vst [vmem:[#allocation2] sm:$0xff] %v1471_v43 }
 0x308   :  { %1749 = shalt.err (!%p1746_p4)
}
 0x309   :  { %s1750_s30 = scalar_lea.hbm %s1944_s5, 128 }
 0x30a   :  { %p1751_p5 = scmp.ne.s32.totalorder %s1944_s5, %s1750_s30  ;;  %p1754_p6 = scmp.lt.u32.totalorder %s1750_s30, %s1944_s5 }
 0x30c   :  { %p1756_p7 = pnand %p1754_p6, %p1751_p5 }
 0x30e   :  { %1759 = shalt.err (!%p1756_p7)
}
 0x30f   :  { %1482 = dma.vmem_to_hbm [thread:$0]  %s1480_s26, 128, %s1944_s5, [#allocation3]  }
 0x310   :  { %1760 = dma.done.wait [#allocation3], 128  }
 0x311   :  { %1761 = vsyncadd [#allocation3], 4294967168 }
 0x312   :  { %1486 = vsyncpa [#allocation3], 1 }

</bundles_post_ra>
